<compile_context>
chip_gen: v7x
topology: tpu7x:2x2x1
jax: 0.10.0
libtpu: 0.0.40
codegen_flags: <defaults>
</compile_context>

<pallas_src>
import functools
import math

import jax
import jax.numpy as jnp
from jax.experimental import pallas as pl
from jax.experimental.pallas import tpu as pltpu


_LANE = 128
_BN_EPS = 1e-5


# ---------------------------------------------------------------------------
# Small helpers
# ---------------------------------------------------------------------------
def _round_up(v, m):
    return (v + m - 1) // m * m


def _pad_to(arr, shape):
    return jnp.pad(arr, [(0, s - d) for d, s in zip(arr.shape, shape)])


def _vmem_limit_bytes(*shapes, dtype_bytes=4):
    """Explicit scoped-VMEM limit sized from the actual buffers (with headroom),
    capped so the same kernel stays safe on v7x's 64 MiB physical VMEM."""
    est = 0
    for s in shapes:
        n = 1
        for d in s:
            n *= d
        est += dtype_bytes * n
    return int(min(max(4 * est, 16 * 1024 * 1024), 48 * 1024 * 1024))


def _pick_time_tile(L):
    """Timestep chunk: a multiple of 8 sublanes (or all of L)."""
    if L % 8 != 0:
        return L
    for cand in (64, 32, 16, 8):
        if L % cand == 0 and L // cand >= 2:
            return cand
    return 8


def _pick_batch_tile(N):
    """Batch chunk: a multiple of 8 sublanes when possible (or all of N)."""
    if N % 8 != 0:
        return N
    for cand in (128, 64, 32, 16, 8):
        if N % cand == 0:
            return cand
    return N


# ---------------------------------------------------------------------------
# Pass 1: BatchNorm1d batch statistics -> per-channel affine (scale, shift).
#   Tiled reduction over M = N*L rows with a VMEM accumulator, so large M never
#   has to be VMEM-resident and the stats stay *global* (not per-tile).
# ---------------------------------------------------------------------------
def _bn_stats_kernel(x_ref, gamma_ref, beta_ref, scale_ref, shift_ref,
                     sum_ref, sumsq_ref, *, block_rows, total_rows, need_mask):
    m = pl.program_id(0)

    @pl.when(m == 0)
    def _init():
        sum_ref[...] = jnp.zeros_like(sum_ref)
        sumsq_ref[...] = jnp.zeros_like(sumsq_ref)

    x = x_ref[...]                                            # (TM, C)
    if need_mask:                                             # static python bool
        rows = m * block_rows + jax.lax.broadcasted_iota(jnp.int32, x.shape, 0)
        x = jnp.where(rows < total_rows, x, 0.0)
    sum_ref[...] += jnp.sum(x, axis=0, keepdims=True)
    sumsq_ref[...] += jnp.sum(x * x, axis=0, keepdims=True)

    @pl.when(m == pl.num_programs(0) - 1)
    def _finalize():
        inv_n = jnp.float32(1.0 / total_rows)
        mean = sum_ref[...] * inv_n
        # biased variance, like PyTorch BatchNorm training-mode normalization
        var = jnp.maximum(sumsq_ref[...] * inv_n - mean * mean, 0.0)
        scale = gamma_ref[...] * jax.lax.rsqrt(var + _BN_EPS)
        scale_ref[...] = scale
        shift_ref[...] = beta_ref[...] - mean * scale


def bn_stats(x2d, gamma, beta):
    M, C = x2d.shape
    TM = M if M <= 1024 else 1024                 # 1024 is a multiple of 8
    grid_m = pl.cdiv(M, TM)
    need_mask = grid_m * TM > M
    kernel = functools.partial(_bn_stats_kernel, block_rows=TM,
                               total_rows=M, need_mask=need_mask)
    scale, shift = pl.pallas_call(
        kernel,
        grid_spec=pltpu.PrefetchScalarGridSpec(
            num_scalar_prefetch=0,
            grid=(grid_m,),
            in_specs=[pl.BlockSpec((TM, C), lambda m: (m, 0)),
                      pl.BlockSpec((1, C), lambda m: (0, 0)),
                      pl.BlockSpec((1, C), lambda m: (0, 0))],
            out_specs=[pl.BlockSpec((1, C), lambda m: (0, 0)),
                       pl.BlockSpec((1, C), lambda m: (0, 0))],
            scratch_shapes=[pltpu.VMEM((1, C), jnp.float32),
                            pltpu.VMEM((1, C), jnp.float32)]),
        out_shape=[jax.ShapeDtypeStruct((1, C), jnp.float32),
                   jax.ShapeDtypeStruct((1, C), jnp.float32)],
        compiler_params=pltpu.CompilerParams(
            dimension_semantics=("arbitrary",),
            vmem_limit_bytes=_vmem_limit_bytes((2, TM, C), (16, 8, _LANE))),
    )(x2d, gamma, beta)
    return scale, shift


# ---------------------------------------------------------------------------
# Pass 2: fused BN-affine + input projection + tanh recurrence + FC tail head.
# ---------------------------------------------------------------------------
def _rnn_fc_kernel(x_ref, scale_ref, shift_ref, wih_ref, bias_ref, whh_ref,
                   fcw_ref, fcb_ref, h0_ref, out_ref, xw_ref, h_ref,
                   *, time_tile, seq_len, n_ahead):
    c = pl.program_id(1)                          # time-chunk index ("arbitrary")

    @pl.when(c == 0)
    def _reset():                                 # new batch chunk -> reset carry
        h_ref[...] = h0_ref[...]

    # ---- BN affine + x @ W_ih (+ fused bias) for the whole chunk, hoisted out
    #      of the serial recurrence.  Per-timestep dots are independent, so the
    #      scheduler pipelines them back-to-back on the MXU. ----
    scale = scale_ref[...]                        # (1, H_in)
    shift = shift_ref[...]                        # (1, H_in)
    wih = wih_ref[...]                            # (H_in, Hp)
    bias = bias_ref[...]                          # (1, Hp)
    for t in range(time_tile):                    # static unroll
        xn_t = x_ref[:, t, :] * scale + shift     # (TN, H_in)  BN applied here
        xw_ref[t] = jnp.dot(xn_t, wih, preferred_element_type=jnp.float32) + bias

    # ---- serial recurrence: only h @ W_hh + tanh on the critical path ----
    whh = whh_ref[...]                            # hoisted, loop-invariant
    t0 = c * time_tile
    last_start = seq_len - n_ahead

    def step(t, h):
        h_new = jnp.tanh(xw_ref[t] +
                         jnp.dot(h, whh, preferred_element_type=jnp.float32))
        g = t0 + t

        @pl.when(g >= last_start)                 # FC head only for tail steps
        def _emit():
            out_ref[g - last_start] = (
                jnp.dot(h_new, fcw_ref[...], preferred_element_type=jnp.float32)
                + fcb_ref[...])

        return h_new

    h_ref[...] = jax.lax.fori_loop(0, time_tile, step, h_ref[...])


def rnn_fc(x, scale, shift, w_ih_t, rnn_bias, w_hh_t, fc_w_t, fc_b, h0p, *,
           n_ahead):
    N, L, Hin = x.shape
    Hp = w_hh_t.shape[0]
    Op = fc_w_t.shape[1]
    TN = _pick_batch_tile(N)
    TL = _pick_time_tile(L)
    assert N % TN == 0 and L % TL == 0

    kernel = functools.partial(_rnn_fc_kernel, time_tile=TL, seq_len=L,
                               n_ahead=n_ahead)
    vmem = _vmem_limit_bytes(
        (2, TN, TL, Hin),                 # double-buffered x chunk
        (TL, TN, Hp), (TN, Hp),           # scratch: xw chunk + h carry
        (Hin, Hp), (Hp, Hp), (Hp, Op),    # weights
        (2, n_ahead, TN, Op),             # resident output block
        (8, Hp), (8, Op), (2, TN, Hp))    # biases / scale / h0

    return pl.pallas_call(
        kernel,
        grid_spec=pltpu.PrefetchScalarGridSpec(
            num_scalar_prefetch=0,
            grid=(N // TN, L // TL),      # (batch chunks, time chunks)
            in_specs=[
                pl.BlockSpec((TN, TL, Hin), lambda b, c: (b, c, 0)),   # x
                pl.BlockSpec((1, Hin), lambda b, c: (0, 0)),           # BN scale
                pl.BlockSpec((1, Hin), lambda b, c: (0, 0)),           # BN shift
                pl.BlockSpec((Hin, Hp), lambda b, c: (0, 0)),          # W_ih^T
                pl.BlockSpec((1, Hp), lambda b, c: (0, 0)),            # b_ih+b_hh
                pl.BlockSpec((Hp, Hp), lambda b, c: (0, 0)),           # W_hh^T
                pl.BlockSpec((Hp, Op), lambda b, c: (0, 0)),           # fc W^T
                pl.BlockSpec((1, Op), lambda b, c: (0, 0)),            # fc b
                pl.BlockSpec((TN, Hp), lambda b, c: (b, 0)),           # h0
            ],
            out_specs=pl.BlockSpec((n_ahead, TN, Op), lambda b, c: (0, b, 0)),
            scratch_shapes=[pltpu.VMEM((TL, TN, Hp), jnp.float32),     # xw chunk
                            pltpu.VMEM((TN, Hp), jnp.float32)]),       # h carry
        out_shape=jax.ShapeDtypeStruct((n_ahead, N, Op), jnp.float32),
        compiler_params=pltpu.CompilerParams(
            # batch axis is independent -> "parallel" lets v7x split it across
            # its two TensorCores; the time axis carries h -> "arbitrary".
            dimension_semantics=("parallel", "arbitrary"),
            vmem_limit_bytes=vmem),
    )(x, scale, shift, w_ih_t, rnn_bias, w_hh_t, fc_w_t, fc_b, h0p)


# ---------------------------------------------------------------------------
# Full module forward
# ---------------------------------------------------------------------------
def rnn_module_forward(x, params, output_size, n_ahead=1, h0=None):
    """x: (N, L, H_in) float32 -> (N, n_ahead, output_size) float32."""
    x = x.astype(jnp.float32)
    N, L, Hin = x.shape
    Hp = params["w_hh_t"].shape[0]
    assert 1 <= n_ahead <= L

    # Pass 1: global BN batch statistics -> per-channel affine.
    scale, shift = bn_stats(x.reshape(N * L, Hin),
                            params["bn_gamma"], params["bn_beta"])

    # Initial hidden state (zero-padded lanes stay zero through the recurrence).
    if h0 is None:
        h0p = jnp.zeros((N, Hp), jnp.float32)
    else:
        h0 = jnp.asarray(h0, jnp.float32)
        if h0.ndim == 3:                 # PyTorch-style (num_layers*D, N, H)
            h0 = h0[0]
        h0p = _pad_to(h0, (N, Hp))

    # Pass 2: fused BN + recurrence + FC on the last n_ahead steps.
    out = rnn_fc(x, scale, shift, params["w_ih_t"], params["rnn_bias"],
                 params["w_hh_t"], params["fc_w_t"], params["fc_b"], h0p,
                 n_ahead=n_ahead)                      # (n_ahead, N, Op)
    out = jnp.transpose(out, (1, 0, 2))                # (N, n_ahead, Op) (tiny)
    return out[:, :, :output_size]


def init_params(key, input_size, hidden_size, output_size):
    """PyTorch-style init; weights stored transposed and zero-padded to 128 lanes."""
    H, O = hidden_size, output_size
    Hp = _round_up(H, _LANE)
    Op = _round_up(O, _LANE)
    ks = jax.random.split(key, 6)
    bound = 1.0 / math.sqrt(H)
    u = lambda k, shape, b: jax.random.uniform(k, shape, jnp.float32, -b, b)
    w_ih = u(ks[0], (H, input_size), bound)            # PyTorch W_ih: (H, H_in)
    w_hh = u(ks[1], (H, H), bound)                     # PyTorch W_hh: (H, H)
    b_ih = u(ks[2], (H,), bound)
    b_hh = u(ks[3], (H,), bound)
    fc_w = u(ks[4], (O, H), bound)                     # PyTorch Linear: (O, H)
    fc_b = u(ks[5], (O,), bound)
    return {
        "bn_gamma": jnp.ones((1, input_size), jnp.float32),
        "bn_beta": jnp.zeros((1, input_size), jnp.float32),
        "w_ih_t": _pad_to(w_ih.T, (input_size, Hp)),   # (H_in, Hp)
        "w_hh_t": _pad_to(w_hh.T, (Hp, Hp)),           # (Hp, Hp)
        "rnn_bias": _pad_to((b_ih + b_hh).reshape(1, H), (1, Hp)),
        "fc_w_t": _pad_to(fc_w.T, (Hp, Op)),           # (Hp, Op)
        "fc_b": _pad_to(fc_b.reshape(1, O), (1, Op)),
    }


# ---------------------------------------------------------------------------
# Pure-JAX reference (unpadded math) for a correctness check.
# ---------------------------------------------------------------------------
def reference_forward(x, params, hidden_size, output_size, n_ahead=1, h0=None):
    N, L, Hin = x.shape
    H, O = hidden_size, output_size
    w_ih = params["w_ih_t"][:, :H]
    w_hh = params["w_hh_t"][:H, :H]
    b = params["rnn_bias"][:, :H]
    fc_w = params["fc_w_t"][:H, :O]
    fc_b = params["fc_b"][:, :O]

    x2d = x.reshape(N * L, Hin)
    mean = jnp.mean(x2d, axis=0, keepdims=True)
    var = jnp.mean((x2d - mean) ** 2, axis=0, keepdims=True)
    xn = ((x2d - mean) * jax.lax.rsqrt(var + _BN_EPS)
          * params["bn_gamma"] + params["bn_beta"]).reshape(N, L, Hin)

    h = jnp.zeros((N, H), jnp.float32) if h0 is None else h0
    hs = []
    for t in range(L):
        h = jnp.tanh(xn[:, t, :] @ w_ih + h @ w_hh + b)
        hs.append(h)
    tail = jnp.stack(hs[-n_ahead:], axis=1)            # (N, n_ahead, H)
    return tail @ fc_w + fc_b                          # (N, n_ahead, O)


if __name__ == "__main__":
    N, L = 2, 16
    input_size, hidden_size, output_size, n_ahead = 4, 32, 4, 2

    key = jax.random.PRNGKey(0)
    k_x, k_p = jax.random.split(key)
    x = jax.random.normal(k_x, (N, L, input_size), jnp.float32)
    params = init_params(k_p, input_size, hidden_size, output_size)

    fwd = jax.jit(rnn_module_forward, static_argnames=("output_size", "n_ahead"))
    out = fwd(x, params, output_size=output_size, n_ahead=n_ahead)
    out = jax.block_until_ready(out)
    assert out.shape == (N, n_ahead, output_size), out.shape

    ref = reference_forward(x, params, hidden_size, output_size, n_ahead=n_ahead)
    err = float(jnp.max(jnp.abs(out - ref)))
    assert err < 2e-3, f"kernel/reference mismatch: max abs err = {err}"

    print("KERNEL_OK")
</pallas_src>

<mosaic_0001>
module attributes {stable_mosaic.version = 11 : i64} {
  func.func @_bn_stats_kernel(%arg0: i32, %arg1: memref<32x4xf32, #tpu.memory_space<vmem>>, %arg2: memref<1x4xf32, #tpu.memory_space<vmem>>, %arg3: memref<1x4xf32, #tpu.memory_space<vmem>>, %arg4: memref<1x4xf32, #tpu.memory_space<vmem>>, %arg5: memref<1x4xf32, #tpu.memory_space<vmem>>, %arg6: memref<1x4xf32, #tpu.memory_space<vmem>>, %arg7: memref<1x4xf32, #tpu.memory_space<vmem>>) attributes {dimension_semantics = [#tpu.dimension_semantics<arbitrary>], iteration_bounds = array<i64: 1>, scalar_prefetch = 0 : i64, scratch_operands = 2 : i64, tpu.core_type = #tpu.core_type<tc>, window_params = [{transform_indices = @transform_0, window_bounds = array<i64: 32, 4>}, {pipeline_mode = #tpu.pipeline_mode<synchronous>, transform_indices = @transform_1, window_bounds = array<i64: 1, 4>}, {pipeline_mode = #tpu.pipeline_mode<synchronous>, transform_indices = @transform_2, window_bounds = array<i64: 1, 4>}, {pipeline_mode = #tpu.pipeline_mode<synchronous>, transform_indices = @transform_3, window_bounds = array<i64: 1, 4>}, {pipeline_mode = #tpu.pipeline_mode<synchronous>, transform_indices = @transform_4, window_bounds = array<i64: 1, 4>}]} {
    %c0_i32 = arith.constant 0 : i32
    %0 = arith.cmpi eq, %arg0, %c0_i32 : i32
    %1 = arith.extui %0 : i1 to i32
    %c0_i32_0 = arith.constant 0 : i32
    %2 = arith.cmpi ne, %1, %c0_i32_0 : i32
    scf.if %2 {
      %cst_13 = arith.constant 0.000000e+00 : f32
      %18 = vector.broadcast %cst_13 : f32 to vector<1x4xf32>
      %c0_14 = arith.constant 0 : index
      %c0_15 = arith.constant 0 : index
      %19 = vector.load %arg6[%c0_14, %c0_15] : memref<1x4xf32, #tpu.memory_space<vmem>>, vector<1x4xf32>
      tpu.vector_store %arg6[%c0_14, %c0_15], %18 {strides = array<i32>} : memref<1x4xf32, #tpu.memory_space<vmem>>, vector<1x4xf32>,
      %cst_16 = arith.constant 0.000000e+00 : f32
      %20 = vector.broadcast %cst_16 : f32 to vector<1x4xf32>
      %c0_17 = arith.constant 0 : index
      %c0_18 = arith.constant 0 : index
      %21 = vector.load %arg7[%c0_17, %c0_18] : memref<1x4xf32, #tpu.memory_space<vmem>>, vector<1x4xf32>
      tpu.vector_store %arg7[%c0_17, %c0_18], %20 {strides = array<i32>} : memref<1x4xf32, #tpu.memory_space<vmem>>, vector<1x4xf32>,
    } else {
    }
    %c0 = arith.constant 0 : index
    %c0_1 = arith.constant 0 : index
    %3 = vector.load %arg1[%c0, %c0_1] : memref<32x4xf32, #tpu.memory_space<vmem>>, vector<32x4xf32>
    %c0_2 = arith.constant 0 : index
    %c0_3 = arith.constant 0 : index
    %4 = vector.load %arg6[%c0_2, %c0_3] : memref<1x4xf32, #tpu.memory_space<vmem>>, vector<1x4xf32>
    %cst = arith.constant dense<0.000000e+00> : vector<4xf32>
    %5 = vector.multi_reduction <add>, %3, %cst [0] : vector<32x4xf32> to vector<4xf32>
    %6 = vector.shape_cast %5 : vector<4xf32> to vector<1x4xf32>
    %7 = arith.addf %4, %6 : vector<1x4xf32>
    %c0_4 = arith.constant 0 : index
    %c0_5 = arith.constant 0 : index
    %8 = vector.load %arg6[%c0_4, %c0_5] : memref<1x4xf32, #tpu.memory_space<vmem>>, vector<1x4xf32>
    tpu.vector_store %arg6[%c0_4, %c0_5], %7 {strides = array<i32>} : memref<1x4xf32, #tpu.memory_space<vmem>>, vector<1x4xf32>,
    %c0_6 = arith.constant 0 : index
    %c0_7 = arith.constant 0 : index
    %9 = vector.load %arg7[%c0_6, %c0_7] : memref<1x4xf32, #tpu.memory_space<vmem>>, vector<1x4xf32>
    %10 = arith.mulf %3, %3 : vector<32x4xf32>
    %cst_8 = arith.constant dense<0.000000e+00> : vector<4xf32>
    %11 = vector.multi_reduction <add>, %10, %cst_8 [0] : vector<32x4xf32> to vector<4xf32>
    %12 = vector.shape_cast %11 : vector<4xf32> to vector<1x4xf32>
    %13 = arith.addf %9, %12 : vector<1x4xf32>
    %c0_9 = arith.constant 0 : index
    %c0_10 = arith.constant 0 : index
    %14 = vector.load %arg7[%c0_9, %c0_10] : memref<1x4xf32, #tpu.memory_space<vmem>>, vector<1x4xf32>
    tpu.vector_store %arg7[%c0_9, %c0_10], %13 {strides = array<i32>} : memref<1x4xf32, #tpu.memory_space<vmem>>, vector<1x4xf32>,
    %c0_i32_11 = arith.constant 0 : i32
    %15 = arith.cmpi eq, %arg0, %c0_i32_11 : i32
    %16 = arith.extui %15 : i1 to i32
    %c0_i32_12 = arith.constant 0 : i32
    %17 = arith.cmpi ne, %16, %c0_i32_12 : i32
    scf.if %17 {
      %c0_13 = arith.constant 0 : index
      %c0_14 = arith.constant 0 : index
      %18 = vector.load %arg6[%c0_13, %c0_14] : memref<1x4xf32, #tpu.memory_space<vmem>>, vector<1x4xf32>
      %cst_15 = arith.constant 3.125000e-02 : f32
      %19 = vector.broadcast %cst_15 : f32 to vector<1x4xf32>
      %20 = arith.mulf %18, %19 : vector<1x4xf32>
      %c0_16 = arith.constant 0 : index
      %c0_17 = arith.constant 0 : index
      %21 = vector.load %arg7[%c0_16, %c0_17] : memref<1x4xf32, #tpu.memory_space<vmem>>, vector<1x4xf32>
      %cst_18 = arith.constant 3.125000e-02 : f32
      %22 = vector.broadcast %cst_18 : f32 to vector<1x4xf32>
      %23 = arith.mulf %21, %22 : vector<1x4xf32>
      %24 = arith.mulf %20, %20 : vector<1x4xf32>
      %25 = arith.subf %23, %24 : vector<1x4xf32>
      %cst_19 = arith.constant 0.000000e+00 : f32
      %26 = vector.broadcast %cst_19 : f32 to vector<1x4xf32>
      %27 = arith.maximumf %25, %26 : vector<1x4xf32>
      %c0_20 = arith.constant 0 : index
      %c0_21 = arith.constant 0 : index
      %28 = vector.load %arg2[%c0_20, %c0_21] : memref<1x4xf32, #tpu.memory_space<vmem>>, vector<1x4xf32>
      %cst_22 = arith.constant 9.99999974E-6 : f32
      %29 = vector.broadcast %cst_22 : f32 to vector<1x4xf32>
      %30 = arith.addf %27, %29 : vector<1x4xf32>
      %31 = math.rsqrt %30 : vector<1x4xf32>
      %32 = arith.mulf %28, %31 : vector<1x4xf32>
      %c0_23 = arith.constant 0 : index
      %c0_24 = arith.constant 0 : index
      %33 = vector.load %arg4[%c0_23, %c0_24] : memref<1x4xf32, #tpu.memory_space<vmem>>, vector<1x4xf32>
      tpu.vector_store %arg4[%c0_23, %c0_24], %32 {strides = array<i32>} : memref<1x4xf32, #tpu.memory_space<vmem>>, vector<1x4xf32>,
      %c0_25 = arith.constant 0 : index
      %c0_26 = arith.constant 0 : index
      %34 = vector.load %arg3[%c0_25, %c0_26] : memref<1x4xf32, #tpu.memory_space<vmem>>, vector<1x4xf32>
      %35 = arith.mulf %20, %32 : vector<1x4xf32>
      %36 = arith.subf %34, %35 : vector<1x4xf32>
      %c0_27 = arith.constant 0 : index
      %c0_28 = arith.constant 0 : index
      %37 = vector.load %arg5[%c0_27, %c0_28] : memref<1x4xf32, #tpu.memory_space<vmem>>, vector<1x4xf32>
      tpu.vector_store %arg5[%c0_27, %c0_28], %36 {strides = array<i32>} : memref<1x4xf32, #tpu.memory_space<vmem>>, vector<1x4xf32>,
    } else {
    }
    return
  }
  func.func @transform_0(%arg0: i32) -> (i32, i32) {
    %c0_i32 = arith.constant 0 : i32
    %c0_i32_0 = arith.constant 0 : i32
    return %arg0, %c0_i32 : i32, i32
  }
  func.func @transform_1(%arg0: i32) -> (i32, i32) {
    %c0_i32 = arith.constant 0 : i32
    %c0_i32_0 = arith.constant 0 : i32
    %c0_i32_1 = arith.constant 0 : i32
    return %c0_i32, %c0_i32_0 : i32, i32
  }
  func.func @transform_2(%arg0: i32) -> (i32, i32) {
    %c0_i32 = arith.constant 0 : i32
    %c0_i32_0 = arith.constant 0 : i32
    %c0_i32_1 = arith.constant 0 : i32
    return %c0_i32, %c0_i32_0 : i32, i32
  }
  func.func @transform_3(%arg0: i32) -> (i32, i32) {
    %c0_i32 = arith.constant 0 : i32
    %c0_i32_0 = arith.constant 0 : i32
    %c0_i32_1 = arith.constant 0 : i32
    return %c0_i32, %c0_i32_0 : i32, i32
  }
  func.func @transform_4(%arg0: i32) -> (i32, i32) {
    %c0_i32 = arith.constant 0 : i32
    %c0_i32_0 = arith.constant 0 : i32
    %c0_i32_1 = arith.constant 0 : i32
    return %c0_i32, %c0_i32_0 : i32, i32
  }
}

module attributes {stable_mosaic.version = 11 : i64} {
  func.func @_rnn_fc_kernel(%arg0: i32, %arg1: i32, %arg2: memref<2x8x4xf32, #tpu.memory_space<vmem>>, %arg3: memref<1x4xf32, #tpu.memory_space<vmem>>, %arg4: memref<1x4xf32, #tpu.memory_space<vmem>>, %arg5: memref<4x128xf32, #tpu.memory_space<vmem>>, %arg6: memref<1x128xf32, #tpu.memory_space<vmem>>, %arg7: memref<128x128xf32, #tpu.memory_space<vmem>>, %arg8: memref<128x128xf32, #tpu.memory_space<vmem>>, %arg9: memref<1x128xf32, #tpu.memory_space<vmem>>, %arg10: memref<2x128xf32, #tpu.memory_space<vmem>>, %arg11: memref<2x2x128xf32, #tpu.memory_space<vmem>>, %arg12: memref<8x2x128xf32, #tpu.memory_space<vmem>>, %arg13: memref<2x128xf32, #tpu.memory_space<vmem>>) attributes {dimension_semantics = [#tpu.dimension_semantics<parallel>, #tpu.dimension_semantics<arbitrary>], iteration_bounds = array<i64: 1, 2>, scalar_prefetch = 0 : i64, scratch_operands = 2 : i64, tpu.core_type = #tpu.core_type<tc>, window_params = [{transform_indices = @transform_0, window_bounds = array<i64: 2, 8, 4>}, {pipeline_mode = #tpu.pipeline_mode<synchronous>, transform_indices = @transform_1, window_bounds = array<i64: 1, 4>}, {pipeline_mode = #tpu.pipeline_mode<synchronous>, transform_indices = @transform_2, window_bounds = array<i64: 1, 4>}, {pipeline_mode = #tpu.pipeline_mode<synchronous>, transform_indices = @transform_3, window_bounds = array<i64: 4, 128>}, {pipeline_mode = #tpu.pipeline_mode<synchronous>, transform_indices = @transform_4, window_bounds = array<i64: 1, 128>}, {pipeline_mode = #tpu.pipeline_mode<synchronous>, transform_indices = @transform_5, window_bounds = array<i64: 128, 128>}, {pipeline_mode = #tpu.pipeline_mode<synchronous>, transform_indices = @transform_6, window_bounds = array<i64: 128, 128>}, {pipeline_mode = #tpu.pipeline_mode<synchronous>, transform_indices = @transform_7, window_bounds = array<i64: 1, 128>}, {transform_indices = @transform_8, window_bounds = array<i64: 2, 128>}, {transform_indices = @transform_9, window_bounds = array<i64: 2, 2, 128>}]} {
    %c0_i32 = arith.constant 0 : i32
    %0 = arith.cmpi eq, %arg1, %c0_i32 : i32
    %1 = arith.extui %0 : i1 to i32
    %c0_i32_0 = arith.constant 0 : i32
    %2 = arith.cmpi ne, %1, %c0_i32_0 : i32
    scf.if %2 {
      %c0_65 = arith.constant 0 : index
      %c0_66 = arith.constant 0 : index
      %109 = vector.load %arg10[%c0_65, %c0_66] : memref<2x128xf32, #tpu.memory_space<vmem>>, vector<2x128xf32>
      %c0_67 = arith.constant 0 : index
      %c0_68 = arith.constant 0 : index
      %110 = vector.load %arg13[%c0_67, %c0_68] : memref<2x128xf32, #tpu.memory_space<vmem>>, vector<2x128xf32>
      tpu.vector_store %arg13[%c0_67, %c0_68], %109 {strides = array<i32>} : memref<2x128xf32, #tpu.memory_space<vmem>>, vector<2x128xf32>,
    } else {
    }
    %c0 = arith.constant 0 : index
    %c0_1 = arith.constant 0 : index
    %3 = vector.load %arg3[%c0, %c0_1] : memref<1x4xf32, #tpu.memory_space<vmem>>, vector<1x4xf32>
    %c0_2 = arith.constant 0 : index
    %c0_3 = arith.constant 0 : index
    %4 = vector.load %arg4[%c0_2, %c0_3] : memref<1x4xf32, #tpu.memory_space<vmem>>, vector<1x4xf32>
    %c0_4 = arith.constant 0 : index
    %c0_5 = arith.constant 0 : index
    %5 = vector.load %arg5[%c0_4, %c0_5] : memref<4x128xf32, #tpu.memory_space<vmem>>, vector<4x128xf32>
    %c0_6 = arith.constant 0 : index
    %c0_7 = arith.constant 0 : index
    %6 = vector.load %arg6[%c0_6, %c0_7] : memref<1x128xf32, #tpu.memory_space<vmem>>, vector<1x128xf32>
    %c0_8 = arith.constant 0 : index
    %c0_9 = arith.constant 0 : index
    %c0_10 = arith.constant 0 : index
    %7 = vector.load %arg2[%c0_8, %c0_9, %c0_10] : memref<2x8x4xf32, #tpu.memory_space<vmem>>, vector<2x1x4xf32>
    %8 = vector.shape_cast %7 : vector<2x1x4xf32> to vector<2x4xf32>
    %9 = vector.broadcast %3 : vector<1x4xf32> to vector<2x4xf32>
    %10 = arith.mulf %8, %9 : vector<2x4xf32>
    %11 = vector.broadcast %4 : vector<1x4xf32> to vector<2x4xf32>
    %12 = arith.addf %10, %11 : vector<2x4xf32>
    %cst = arith.constant dense<0.000000e+00> : vector<2x128xf32>
    %13 = tpu.matmul %12, %5, %cst {dimension_numbers = #tpu.dot_dimension_numbers<[1], [0], [0], [1], [0, 0, 1, 1], [], []>} : vector<2x4xf32>, vector<4x128xf32>, vector<2x128xf32> -> vector<2x128xf32>
    %14 = vector.broadcast %6 : vector<1x128xf32> to vector<2x128xf32>
    %15 = arith.addf %13, %14 : vector<2x128xf32>
    %c0_11 = arith.constant 0 : index
    %c0_12 = arith.constant 0 : index
    %c0_13 = arith.constant 0 : index
    %16 = vector.load %arg12[%c0_11, %c0_12, %c0_13] : memref<8x2x128xf32, #tpu.memory_space<vmem>>, vector<1x2x128xf32>
    %17 = vector.shape_cast %16 : vector<1x2x128xf32> to vector<2x128xf32>
    %18 = vector.shape_cast %15 : vector<2x128xf32> to vector<1x2x128xf32>
    tpu.vector_store %arg12[%c0_11, %c0_12, %c0_13], %18 {strides = array<i32>} : memref<8x2x128xf32, #tpu.memory_space<vmem>>, vector<1x2x128xf32>,
    %c0_14 = arith.constant 0 : index
    %c1 = arith.constant 1 : index
    %c0_15 = arith.constant 0 : index
    %19 = vector.load %arg2[%c0_14, %c1, %c0_15] : memref<2x8x4xf32, #tpu.memory_space<vmem>>, vector<2x1x4xf32>
    %20 = vector.shape_cast %19 : vector<2x1x4xf32> to vector<2x4xf32>
    %21 = vector.broadcast %3 : vector<1x4xf32> to vector<2x4xf32>
    %22 = arith.mulf %20, %21 : vector<2x4xf32>
    %23 = vector.broadcast %4 : vector<1x4xf32> to vector<2x4xf32>
    %24 = arith.addf %22, %23 : vector<2x4xf32>
    %cst_16 = arith.constant dense<0.000000e+00> : vector<2x128xf32>
    %25 = tpu.matmul %24, %5, %cst_16 {dimension_numbers = #tpu.dot_dimension_numbers<[1], [0], [0], [1], [0, 0, 1, 1], [], []>} : vector<2x4xf32>, vector<4x128xf32>, vector<2x128xf32> -> vector<2x128xf32>
    %26 = vector.broadcast %6 : vector<1x128xf32> to vector<2x128xf32>
    %27 = arith.addf %25, %26 : vector<2x128xf32>
    %c1_17 = arith.constant 1 : index
    %c0_18 = arith.constant 0 : index
    %c0_19 = arith.constant 0 : index
    %28 = vector.load %arg12[%c1_17, %c0_18, %c0_19] : memref<8x2x128xf32, #tpu.memory_space<vmem>>, vector<1x2x128xf32>
    %29 = vector.shape_cast %28 : vector<1x2x128xf32> to vector<2x128xf32>
    %30 = vector.shape_cast %27 : vector<2x128xf32> to vector<1x2x128xf32>
    tpu.vector_store %arg12[%c1_17, %c0_18, %c0_19], %30 {strides = array<i32>} : memref<8x2x128xf32, #tpu.memory_space<vmem>>, vector<1x2x128xf32>,
    %c0_20 = arith.constant 0 : index
    %c2 = arith.constant 2 : index
    %c0_21 = arith.constant 0 : index
    %31 = vector.load %arg2[%c0_20, %c2, %c0_21] : memref<2x8x4xf32, #tpu.memory_space<vmem>>, vector<2x1x4xf32>
    %32 = vector.shape_cast %31 : vector<2x1x4xf32> to vector<2x4xf32>
    %33 = vector.broadcast %3 : vector<1x4xf32> to vector<2x4xf32>
    %34 = arith.mulf %32, %33 : vector<2x4xf32>
    %35 = vector.broadcast %4 : vector<1x4xf32> to vector<2x4xf32>
    %36 = arith.addf %34, %35 : vector<2x4xf32>
    %cst_22 = arith.constant dense<0.000000e+00> : vector<2x128xf32>
    %37 = tpu.matmul %36, %5, %cst_22 {dimension_numbers = #tpu.dot_dimension_numbers<[1], [0], [0], [1], [0, 0, 1, 1], [], []>} : vector<2x4xf32>, vector<4x128xf32>, vector<2x128xf32> -> vector<2x128xf32>
    %38 = vector.broadcast %6 : vector<1x128xf32> to vector<2x128xf32>
    %39 = arith.addf %37, %38 : vector<2x128xf32>
    %c2_23 = arith.constant 2 : index
    %c0_24 = arith.constant 0 : index
    %c0_25 = arith.constant 0 : index
    %40 = vector.load %arg12[%c2_23, %c0_24, %c0_25] : memref<8x2x128xf32, #tpu.memory_space<vmem>>, vector<1x2x128xf32>
    %41 = vector.shape_cast %40 : vector<1x2x128xf32> to vector<2x128xf32>
    %42 = vector.shape_cast %39 : vector<2x128xf32> to vector<1x2x128xf32>
    tpu.vector_store %arg12[%c2_23, %c0_24, %c0_25], %42 {strides = array<i32>} : memref<8x2x128xf32, #tpu.memory_space<vmem>>, vector<1x2x128xf32>,
    %c0_26 = arith.constant 0 : index
    %c3 = arith.constant 3 : index
    %c0_27 = arith.constant 0 : index
    %43 = vector.load %arg2[%c0_26, %c3, %c0_27] : memref<2x8x4xf32, #tpu.memory_space<vmem>>, vector<2x1x4xf32>
    %44 = vector.shape_cast %43 : vector<2x1x4xf32> to vector<2x4xf32>
    %45 = vector.broadcast %3 : vector<1x4xf32> to vector<2x4xf32>
    %46 = arith.mulf %44, %45 : vector<2x4xf32>
    %47 = vector.broadcast %4 : vector<1x4xf32> to vector<2x4xf32>
    %48 = arith.addf %46, %47 : vector<2x4xf32>
    %cst_28 = arith.constant dense<0.000000e+00> : vector<2x128xf32>
    %49 = tpu.matmul %48, %5, %cst_28 {dimension_numbers = #tpu.dot_dimension_numbers<[1], [0], [0], [1], [0, 0, 1, 1], [], []>} : vector<2x4xf32>, vector<4x128xf32>, vector<2x128xf32> -> vector<2x128xf32>
    %50 = vector.broadcast %6 : vector<1x128xf32> to vector<2x128xf32>
    %51 = arith.addf %49, %50 : vector<2x128xf32>
    %c3_29 = arith.constant 3 : index
    %c0_30 = arith.constant 0 : index
    %c0_31 = arith.constant 0 : index
    %52 = vector.load %arg12[%c3_29, %c0_30, %c0_31] : memref<8x2x128xf32, #tpu.memory_space<vmem>>, vector<1x2x128xf32>
    %53 = vector.shape_cast %52 : vector<1x2x128xf32> to vector<2x128xf32>
    %54 = vector.shape_cast %51 : vector<2x128xf32> to vector<1x2x128xf32>
    tpu.vector_store %arg12[%c3_29, %c0_30, %c0_31], %54 {strides = array<i32>} : memref<8x2x128xf32, #tpu.memory_space<vmem>>, vector<1x2x128xf32>,
    %c0_32 = arith.constant 0 : index
    %c4 = arith.constant 4 : index
    %c0_33 = arith.constant 0 : index
    %55 = vector.load %arg2[%c0_32, %c4, %c0_33] : memref<2x8x4xf32, #tpu.memory_space<vmem>>, vector<2x1x4xf32>
    %56 = vector.shape_cast %55 : vector<2x1x4xf32> to vector<2x4xf32>
    %57 = vector.broadcast %3 : vector<1x4xf32> to vector<2x4xf32>
    %58 = arith.mulf %56, %57 : vector<2x4xf32>
    %59 = vector.broadcast %4 : vector<1x4xf32> to vector<2x4xf32>
    %60 = arith.addf %58, %59 : vector<2x4xf32>
    %cst_34 = arith.constant dense<0.000000e+00> : vector<2x128xf32>
    %61 = tpu.matmul %60, %5, %cst_34 {dimension_numbers = #tpu.dot_dimension_numbers<[1], [0], [0], [1], [0, 0, 1, 1], [], []>} : vector<2x4xf32>, vector<4x128xf32>, vector<2x128xf32> -> vector<2x128xf32>
    %62 = vector.broadcast %6 : vector<1x128xf32> to vector<2x128xf32>
    %63 = arith.addf %61, %62 : vector<2x128xf32>
    %c4_35 = arith.constant 4 : index
    %c0_36 = arith.constant 0 : index
    %c0_37 = arith.constant 0 : index
    %64 = vector.load %arg12[%c4_35, %c0_36, %c0_37] : memref<8x2x128xf32, #tpu.memory_space<vmem>>, vector<1x2x128xf32>
    %65 = vector.shape_cast %64 : vector<1x2x128xf32> to vector<2x128xf32>
    %66 = vector.shape_cast %63 : vector<2x128xf32> to vector<1x2x128xf32>
    tpu.vector_store %arg12[%c4_35, %c0_36, %c0_37], %66 {strides = array<i32>} : memref<8x2x128xf32, #tpu.memory_space<vmem>>, vector<1x2x128xf32>,
    %c0_38 = arith.constant 0 : index
    %c5 = arith.constant 5 : index
    %c0_39 = arith.constant 0 : index
    %67 = vector.load %arg2[%c0_38, %c5, %c0_39] : memref<2x8x4xf32, #tpu.memory_space<vmem>>, vector<2x1x4xf32>
    %68 = vector.shape_cast %67 : vector<2x1x4xf32> to vector<2x4xf32>
    %69 = vector.broadcast %3 : vector<1x4xf32> to vector<2x4xf32>
    %70 = arith.mulf %68, %69 : vector<2x4xf32>
    %71 = vector.broadcast %4 : vector<1x4xf32> to vector<2x4xf32>
    %72 = arith.addf %70, %71 : vector<2x4xf32>
    %cst_40 = arith.constant dense<0.000000e+00> : vector<2x128xf32>
    %73 = tpu.matmul %72, %5, %cst_40 {dimension_numbers = #tpu.dot_dimension_numbers<[1], [0], [0], [1], [0, 0, 1, 1], [], []>} : vector<2x4xf32>, vector<4x128xf32>, vector<2x128xf32> -> vector<2x128xf32>
    %74 = vector.broadcast %6 : vector<1x128xf32> to vector<2x128xf32>
    %75 = arith.addf %73, %74 : vector<2x128xf32>
    %c5_41 = arith.constant 5 : index
    %c0_42 = arith.constant 0 : index
    %c0_43 = arith.constant 0 : index
    %76 = vector.load %arg12[%c5_41, %c0_42, %c0_43] : memref<8x2x128xf32, #tpu.memory_space<vmem>>, vector<1x2x128xf32>
    %77 = vector.shape_cast %76 : vector<1x2x128xf32> to vector<2x128xf32>
    %78 = vector.shape_cast %75 : vector<2x128xf32> to vector<1x2x128xf32>
    tpu.vector_store %arg12[%c5_41, %c0_42, %c0_43], %78 {strides = array<i32>} : memref<8x2x128xf32, #tpu.memory_space<vmem>>, vector<1x2x128xf32>,
    %c0_44 = arith.constant 0 : index
    %c6 = arith.constant 6 : index
    %c0_45 = arith.constant 0 : index
    %79 = vector.load %arg2[%c0_44, %c6, %c0_45] : memref<2x8x4xf32, #tpu.memory_space<vmem>>, vector<2x1x4xf32>
    %80 = vector.shape_cast %79 : vector<2x1x4xf32> to vector<2x4xf32>
    %81 = vector.broadcast %3 : vector<1x4xf32> to vector<2x4xf32>
    %82 = arith.mulf %80, %81 : vector<2x4xf32>
    %83 = vector.broadcast %4 : vector<1x4xf32> to vector<2x4xf32>
    %84 = arith.addf %82, %83 : vector<2x4xf32>
    %cst_46 = arith.constant dense<0.000000e+00> : vector<2x128xf32>
    %85 = tpu.matmul %84, %5, %cst_46 {dimension_numbers = #tpu.dot_dimension_numbers<[1], [0], [0], [1], [0, 0, 1, 1], [], []>} : vector<2x4xf32>, vector<4x128xf32>, vector<2x128xf32> -> vector<2x128xf32>
    %86 = vector.broadcast %6 : vector<1x128xf32> to vector<2x128xf32>
    %87 = arith.addf %85, %86 : vector<2x128xf32>
    %c6_47 = arith.constant 6 : index
    %c0_48 = arith.constant 0 : index
    %c0_49 = arith.constant 0 : index
    %88 = vector.load %arg12[%c6_47, %c0_48, %c0_49] : memref<8x2x128xf32, #tpu.memory_space<vmem>>, vector<1x2x128xf32>
    %89 = vector.shape_cast %88 : vector<1x2x128xf32> to vector<2x128xf32>
    %90 = vector.shape_cast %87 : vector<2x128xf32> to vector<1x2x128xf32>
    tpu.vector_store %arg12[%c6_47, %c0_48, %c0_49], %90 {strides = array<i32>} : memref<8x2x128xf32, #tpu.memory_space<vmem>>, vector<1x2x128xf32>,
    %c0_50 = arith.constant 0 : index
    %c7 = arith.constant 7 : index
    %c0_51 = arith.constant 0 : index
    %91 = vector.load %arg2[%c0_50, %c7, %c0_51] : memref<2x8x4xf32, #tpu.memory_space<vmem>>, vector<2x1x4xf32>
    %92 = vector.shape_cast %91 : vector<2x1x4xf32> to vector<2x4xf32>
    %93 = vector.broadcast %3 : vector<1x4xf32> to vector<2x4xf32>
    %94 = arith.mulf %92, %93 : vector<2x4xf32>
    %95 = vector.broadcast %4 : vector<1x4xf32> to vector<2x4xf32>
    %96 = arith.addf %94, %95 : vector<2x4xf32>
    %cst_52 = arith.constant dense<0.000000e+00> : vector<2x128xf32>
    %97 = tpu.matmul %96, %5, %cst_52 {dimension_numbers = #tpu.dot_dimension_numbers<[1], [0], [0], [1], [0, 0, 1, 1], [], []>} : vector<2x4xf32>, vector<4x128xf32>, vector<2x128xf32> -> vector<2x128xf32>
    %98 = vector.broadcast %6 : vector<1x128xf32> to vector<2x128xf32>
    %99 = arith.addf %97, %98 : vector<2x128xf32>
    %c7_53 = arith.constant 7 : index
    %c0_54 = arith.constant 0 : index
    %c0_55 = arith.constant 0 : index
    %100 = vector.load %arg12[%c7_53, %c0_54, %c0_55] : memref<8x2x128xf32, #tpu.memory_space<vmem>>, vector<1x2x128xf32>
    %101 = vector.shape_cast %100 : vector<1x2x128xf32> to vector<2x128xf32>
    %102 = vector.shape_cast %99 : vector<2x128xf32> to vector<1x2x128xf32>
    tpu.vector_store %arg12[%c7_53, %c0_54, %c0_55], %102 {strides = array<i32>} : memref<8x2x128xf32, #tpu.memory_space<vmem>>, vector<1x2x128xf32>,
    %c0_56 = arith.constant 0 : index
    %c0_57 = arith.constant 0 : index
    %103 = vector.load %arg7[%c0_56, %c0_57] : memref<128x128xf32, #tpu.memory_space<vmem>>, vector<128x128xf32>
    %c8_i32 = arith.constant 8 : i32
    %104 = arith.muli %arg1, %c8_i32 : i32
    %c0_58 = arith.constant 0 : index
    %c0_59 = arith.constant 0 : index
    %105 = vector.load %arg13[%c0_58, %c0_59] : memref<2x128xf32, #tpu.memory_space<vmem>>, vector<2x128xf32>
    %c0_i32_60 = arith.constant 0 : i32
    %c8_i32_61 = arith.constant 8 : i32
    %106 = arith.addi %c0_i32_60, %c8_i32_61 : i32
    %c1_i32 = arith.constant 1 : i32
    %107 = scf.for %arg14 = %c0_i32_60 to %106 step %c1_i32 iter_args(%arg15 = %105) -> (vector<2x128xf32>)  : i32 {
      %109 = arith.index_cast %arg14 : i32 to index
      %c0_65 = arith.constant 0 : index
      %c0_66 = arith.constant 0 : index
      %110 = vector.load %arg12[%109, %c0_65, %c0_66] : memref<8x2x128xf32, #tpu.memory_space<vmem>>, vector<1x2x128xf32>
      %111 = vector.shape_cast %110 : vector<1x2x128xf32> to vector<2x128xf32>
      %cst_67 = arith.constant dense<0.000000e+00> : vector<2x128xf32>
      %112 = tpu.matmul %arg15, %103, %cst_67 {dimension_numbers = #tpu.dot_dimension_numbers<[1], [0], [0], [1], [0, 0, 1, 1], [], []>} : vector<2x128xf32>, vector<128x128xf32>, vector<2x128xf32> -> vector<2x128xf32>
      %113 = arith.addf %111, %112 : vector<2x128xf32>
      %114 = math.tanh %113 : vector<2x128xf32>
      %115 = arith.addi %104, %arg14 : i32
      %c14_i32 = arith.constant 14 : i32
      %116 = arith.cmpi sge, %115, %c14_i32 : i32
      %117 = arith.extui %116 : i1 to i32
      %c0_i32_68 = arith.constant 0 : i32
      %118 = arith.cmpi ne, %117, %c0_i32_68 : i32
      scf.if %118 {
        %c0_69 = arith.constant 0 : index
        %c0_70 = arith.constant 0 : index
        %119 = vector.load %arg8[%c0_69, %c0_70] : memref<128x128xf32, #tpu.memory_space<vmem>>, vector<128x128xf32>
        %cst_71 = arith.constant dense<0.000000e+00> : vector<2x128xf32>
        %120 = tpu.matmul %114, %119, %cst_71 {dimension_numbers = #tpu.dot_dimension_numbers<[1], [0], [0], [1], [0, 0, 1, 1], [], []>} : vector<2x128xf32>, vector<128x128xf32>, vector<2x128xf32> -> vector<2x128xf32>
        %c0_72 = arith.constant 0 : index
        %c0_73 = arith.constant 0 : index
        %121 = vector.load %arg9[%c0_72, %c0_73] : memref<1x128xf32, #tpu.memory_space<vmem>>, vector<1x128xf32>
        %122 = vector.broadcast %121 : vector<1x128xf32> to vector<2x128xf32>
        %123 = arith.addf %120, %122 : vector<2x128xf32>
        %c14_i32_74 = arith.constant 14 : i32
        %124 = arith.subi %115, %c14_i32_74 : i32
        %125 = arith.index_cast %124 : i32 to index
        %c0_75 = arith.constant 0 : index
        %c0_76 = arith.constant 0 : index
        %126 = vector.load %arg11[%125, %c0_75, %c0_76] : memref<2x2x128xf32, #tpu.memory_space<vmem>>, vector<1x2x128xf32>
        %127 = vector.shape_cast %126 : vector<1x2x128xf32> to vector<2x128xf32>
        %128 = vector.shape_cast %123 : vector<2x128xf32> to vector<1x2x128xf32>
        tpu.vector_store %arg11[%125, %c0_75, %c0_76], %128 {strides = array<i32>} : memref<2x2x128xf32, #tpu.memory_space<vmem>>, vector<1x2x128xf32>,
      } else {
      }
      scf.yield %114 : vector<2x128xf32>
    }
    %c8_i32_62 = arith.constant 8 : i32
    %c0_63 = arith.constant 0 : index
    %c0_64 = arith.constant 0 : index
    %108 = vector.load %arg13[%c0_63, %c0_64] : memref<2x128xf32, #tpu.memory_space<vmem>>, vector<2x128xf32>
    tpu.vector_store %arg13[%c0_63, %c0_64], %107 {strides = array<i32>} : memref<2x128xf32, #tpu.memory_space<vmem>>, vector<2x128xf32>,
    return
  }
  func.func @transform_0(%arg0: i32, %arg1: i32) -> (i32, i32, i32) {
    %c0_i32 = arith.constant 0 : i32
    %c0_i32_0 = arith.constant 0 : i32
    return %arg0, %arg1, %c0_i32 : i32, i32, i32
  }
  func.func @transform_1(%arg0: i32, %arg1: i32) -> (i32, i32) {
    %c0_i32 = arith.constant 0 : i32
    %c0_i32_0 = arith.constant 0 : i32
    %c0_i32_1 = arith.constant 0 : i32
    return %c0_i32, %c0_i32_0 : i32, i32
  }
  func.func @transform_2(%arg0: i32, %arg1: i32) -> (i32, i32) {
    %c0_i32 = arith.constant 0 : i32
    %c0_i32_0 = arith.constant 0 : i32
    %c0_i32_1 = arith.constant 0 : i32
    return %c0_i32, %c0_i32_0 : i32, i32
  }
  func.func @transform_3(%arg0: i32, %arg1: i32) -> (i32, i32) {
    %c0_i32 = arith.constant 0 : i32
    %c0_i32_0 = arith.constant 0 : i32
    %c0_i32_1 = arith.constant 0 : i32
    return %c0_i32, %c0_i32_0 : i32, i32
  }
  func.func @transform_4(%arg0: i32, %arg1: i32) -> (i32, i32) {
    %c0_i32 = arith.constant 0 : i32
    %c0_i32_0 = arith.constant 0 : i32
    %c0_i32_1 = arith.constant 0 : i32
    return %c0_i32, %c0_i32_0 : i32, i32
  }
  func.func @transform_5(%arg0: i32, %arg1: i32) -> (i32, i32) {
    %c0_i32 = arith.constant 0 : i32
    %c0_i32_0 = arith.constant 0 : i32
    %c0_i32_1 = arith.constant 0 : i32
    return %c0_i32, %c0_i32_0 : i32, i32
  }
  func.func @transform_6(%arg0: i32, %arg1: i32) -> (i32, i32) {
    %c0_i32 = arith.constant 0 : i32
    %c0_i32_0 = arith.constant 0 : i32
    %c0_i32_1 = arith.constant 0 : i32
    return %c0_i32, %c0_i32_0 : i32, i32
  }
  func.func @transform_7(%arg0: i32, %arg1: i32) -> (i32, i32) {
    %c0_i32 = arith.constant 0 : i32
    %c0_i32_0 = arith.constant 0 : i32
    %c0_i32_1 = arith.constant 0 : i32
    return %c0_i32, %c0_i32_0 : i32, i32
  }
  func.func @transform_8(%arg0: i32, %arg1: i32) -> (i32, i32) {
    %c0_i32 = arith.constant 0 : i32
    %c0_i32_0 = arith.constant 0 : i32
    return %arg0, %c0_i32 : i32, i32
  }
  func.func @transform_9(%arg0: i32, %arg1: i32) -> (i32, i32, i32) {
    %c0_i32 = arith.constant 0 : i32
    %c0_i32_0 = arith.constant 0 : i32
    %c0_i32_1 = arith.constant 0 : i32
    return %c0_i32, %arg0, %c0_i32_0 : i32, i32, i32
  }
}

</mosaic_0001>

<bundles_post_ra>
// kernel: rnn_module_forward.2
= control target key start
LH: loop header
LB: loop body
LE: loop exit
PB: predicated region body
PF: predicated region fallthrough
CT: control target
= control target key end

     0   :  { %vm20_vm0 = vcmask 24576   ;;  %vm28_vm1 = vcmask 31744   ;;  %v95_v0 = vmov 0.0   ;;  %s159_s0 = inlined_call_operand.vmem [shape: f32[32,4], index: 0, kind: input, shape index: {}]   ;;  %s160_s1 = inlined_call_operand.vmem [shape: f32[1,4], index: 1, kind: input, shape index: {}]   ;;  %s161_s2 = inlined_call_operand.vmem [shape: f32[1,4], index: 2, kind: input, shape index: {}]   ;;  %s162_s3 = inlined_call_operand.vmem [shape: f32[1,4], index: 3, kind: output, shape index: {0}]   ;;  %s163_s4 = inlined_call_operand.vmem [shape: f32[1,4], index: 4, kind: output, shape index: {1}]  }
   0x1   :  { %21 = vst.msk [vmem:[#allocation2] sm:$0x1] %vm20_vm0, %v95_v0  ;;  %22 = vst.msk [vmem:[#allocation3] sm:$0x1] %vm20_vm0, %v95_v0  ;;  %v23_v1 = vld [vmem:[%s159_s0] sm:$0xff]  ;;  %v24_v2 = vld [vmem:[%s159_s0 + $0x8] sm:$0xff] }
   0x2   :  { %v25_v3 = vld [vmem:[%s159_s0 + $0x10] sm:$0xff]  ;;  %v26_v4 = vld [vmem:[%s159_s0 + $0x18] sm:$0xff]  ;;  %v29_v5 = vsel %vm28_vm1, %v23_v1, 0.0  ;;  %v30_v6 = vsel %vm28_vm1, %v24_v2, 0.0  ;;  %v46_v8 = vmul.f32 %v23_v1, %v23_v1  ;;  %v47_v10 = vmul.f32 %v24_v2, %v24_v2  ;;  %v75_v47 = vld [vmem:[%s160_s1] sm:$0x1] }
   0x3   :  { %v32_v7 = vsel %vm28_vm1, %v25_v3, 0.0  ;;  %v31_v9 = vadd.f32 %v30_v6, %v29_v5  ;;  %v48_v11 = vmul.f32 %v25_v3, %v25_v3  ;;  %v34_v12 = vsel %vm28_vm1, %v26_v4, 0.0  ;;  %v80_v50 = vld [vmem:[%s161_s2] sm:$0x1] }
   0x4   :  { %v49_v13 = vmul.f32 %v26_v4, %v26_v4  ;;  %v50_v14 = vsel %vm28_vm1, %v46_v8, 0.0  ;;  %v51_v16 = vsel %vm28_vm1, %v47_v10, 0.0 }
   0x5   :  { %v33_v15 = vadd.f32 %v32_v7, %v31_v9  ;;  %v53_v17 = vsel %vm28_vm1, %v48_v11, 0.0  ;;  %v52_v18 = vadd.f32 %v51_v16, %v50_v14 }
   0x6   :  { %v55_v20 = vsel %vm28_vm1, %v49_v13, 0.0 }
   0x7   :  { %v35_v19 = vadd.f32 %v34_v12, %v33_v15  ;;  %v54_v21 = vadd.f32 %v53_v17, %v52_v18 }
   0x8   :  { %v27_v31 = vld [vmem:[#allocation2] sm:$0x1]  ;;  %v45_v36 = vld [vmem:[#allocation3] sm:$0x1] }
   0x9   :  { %v36_v22 = vrot.slane %v35_v19, 4  ;;  %v56_v23 = vadd.f32 %v55_v20, %v54_v21 }
   0xb   :  { %v37_v24 = vadd.f32 %v36_v22, %v35_v19  ;;  %v57_v25 = vrot.slane %v56_v23, 4 }
   0xd   :  { %v38_v26 = vrot.slane %v37_v24, 2  ;;  %v58_v27 = vadd.f32 %v57_v25, %v56_v23 }
   0xf   :  { %v39_v28 = vadd.f32 %v38_v26, %v37_v24  ;;  %v59_v29 = vrot.slane %v58_v27, 2 }
  0x11   :  { %v40_v30 = vrot.slane %v39_v28, 1  ;;  %v60_v32 = vadd.f32 %v59_v29, %v58_v27 }
  0x13   :  { %v41_v33 = vadd.f32 %v40_v30, %v39_v28  ;;  %v61_v34 = vrot.slane %v60_v32, 1 }
  0x15   :  { %v42_v35 = vadd.f32 %v41_v33, %v27_v31  ;;  %v62_v37 = vadd.f32 %v61_v34, %v60_v32 }
  0x17   :  { %44 = vst.msk [vmem:[#allocation2] sm:$0x1] %vm20_vm0, %v42_v35  ;;  %v63_v38 = vadd.f32 %v62_v37, %v45_v36 }
  0x19   :  { %64 = vst.msk [vmem:[#allocation3] sm:$0x1] %vm20_vm0, %v63_v38 }
  0x1e   :  { %v68_v39 = vld [vmem:[#allocation2] sm:$0x1] }
  0x1f   :  { %v69_v40 = vmul.f32 0.03125, %v68_v39 }
  0x20   :  { %v70_v41 = vld [vmem:[#allocation3] sm:$0x1] }
  0x21   :  { %v72_v42 = vmul.f32 %v69_v40, %v69_v40  ;;  %v71_v43 = vmul.f32 0.03125, %v70_v41 }
  0x23   :  { %v73_v44 = vsub.f32 %v71_v43, %v72_v42 }
  0x25   :  { %v74_v45 = vmax.f32 %v73_v44, 0.0 }
  0x27   :  { %v76_v46 = vadd.f32 1e-05, %v74_v45 }
  0x29   :  { %93 = vrsqrt.f32 %v76_v46 }
  0x33   :  { %v94_v48 = vpop.eup %93 }
  0x34   :  { %v78_v49 = vmul.f32 %v94_v48, %v75_v47 }
  0x36   :  { %79 = vst.msk [vmem:[%s162_s3] sm:$0x1] %vm20_vm0, %v78_v49  ;;  %v81_v51 = vmul.f32 %v78_v49, %v69_v40 }
  0x38   :  { %v82_v52 = vsub.f32 %v80_v50, %v81_v51 }
  0x3a   :  { %83 = vst.msk [vmem:[%s163_s4] sm:$0x1] %vm20_vm0, %v82_v52 }

// kernel: rnn_module_forward.3
= control target key start
LH: loop header
LB: loop body
LE: loop exit
PB: predicated region body
PF: predicated region fallthrough
CT: control target
= control target key end

     0   :  { %14 = vsyncpa [#allocation6], 0  ;;  %s1908_s30 = smov 0   ;;  %s1910_s10 = smov 0   ;;  %s2266_s0 = inlined_call_operand.vmem [shape: f32[2,16,4], index: 0, kind: input, shape index: {}]   ;;  %s2267_s1 = inlined_call_operand.vmem [shape: f32[1,4], index: 1, kind: input, shape index: {}]   ;;  %s2268_s2 = inlined_call_operand.vmem [shape: f32[1,4], index: 2, kind: input, shape index: {}]   ;;  %s2269_s3 = inlined_call_operand.vmem [shape: f32[4,128], index: 3, kind: input, shape index: {}]   ;;  %s2270_s4 = inlined_call_operand.vmem [shape: f32[1,128], index: 4, kind: input, shape index: {}]   ;;  %s2271_s5 = inlined_call_operand.vmem [shape: f32[128,128], index: 5, kind: input, shape index: {}]   ;;  %s2272_s6 = inlined_call_operand.hbm [shape: f32[128,128], index: 6, kind: input, shape index: {}]   ;;  %s2273_s7 = inlined_call_operand.vmem [shape: f32[1,128], index: 7, kind: input, shape index: {}]   ;;  %s2274_s8 = inlined_call_operand.vmem [shape: f32[2,128], index: 8, kind: input, shape index: {}]   ;;  %s2275_s9 = inlined_call_operand.vmem [shape: f32[2,2,128], index: 9, kind: output, shape index: {}]  }
   0x1   :  { %s1912_s11 = smov 0   ;;  %s1914_s12 = smov 0  }
   0x2   :  { %s1916_s13 = smov 0  }
   0x3 LB: > { %s1433_s14 = sadd.s32 4294967295, %s1837_s13   ;;  %s29_s15 = sadd.s32 1, %s1833_s12  ;;  %s1837_s13 = sphi %s1916_s13, %s20_s13   ;;  %s1833_s12 = sphi %s1914_s12, %s2293_s12   ;;  %s1829_s11 = sphi %s1912_s11, %s2292_s11   ;;  %s1825_s10 = sphi %s1910_s10, %s2291_s10   ;;  %s1821_s30 = sphi %s1908_s30, %s2290_s30  }
   0x4   : > { %p30_p0 = scmp.ge.s32.totalorder %s29_s15, 2  ;;  %s41_s16 = sadd.s32 1, %s1825_s10 }
   0x5   : > { %p48_p1 = scmp.ne.s32.totalorder %s1825_s10, %s1821_s30  ;;  %p49_p2 = scmp.eq.s32.totalorder %s1837_s13, 0 }
   0x6   : > { %s2295_s15 = smov (%p30_p0, %s29_s15), 0  ;;  %p1434_p4 = scmp.ge.s32.totalorder %s1837_s13, 1 }
   0x7   : > { %2280 = sst [smem:[#allocation8_spill]] %s2295_s15  ;;  %p1941_p3 = por %p49_p2, %p48_p1 }
   0x8   : > { %s37_s18 = ssub.s32 %s1833_s12, %s2295_s15  ;;  %p264_p5 = scmp.lt.s32.totalorder %s1837_s13, 3 }
   0x9   : > { %s2281_s17 = scalar_select %p1941_p3, 1, 0 }
   0xa   : > { %p39_p6 = scmp.eq.s32.totalorder %s37_s18, 0  ;;  %p1949_p7 = pnand %p1434_p4, %p264_p5 }
   0xb   : > { %p1953_p8 = scmp.eq.s32.totalorder %s1433_s14, 0  ;;  %s1847_s22 = smov [#allocation5]  }
   0xc   : > { %s2282_s19 = scalar_select %p1949_p7, 1, 0 }
   0xd   : > { %s2283_s20 = scalar_select %p1953_p8, 1, 0 }
   0xe   : > { %s1958_s21 = scalar_select %p39_p6, %s1825_s10, %s41_s16  }
   0xf   : > { %p1684_p9 = pneg %p1949_p7  ;;  %s291_s23 = sshll.u32 %s1847_s22, 4  ;;  %s292_s23 = int_to_ptr.vmem [resolvable:$true] %s291_s23 }
  0x10   : > { %s1759_s27 = scalar_lea.hbm %s2272_s6, 2048 }
  0x11   : > { %p1964_p10 = pnand %p1953_p8, %p1684_p9  ;;  %p1760_p11 = scmp.ne.s32.totalorder %s2272_s6, %s1759_s27 }
  0x12   : > { %p1766_p1 = scmp.lt.u32.totalorder %s1759_s27, %s2272_s6 }
  0x13   : > { %p1761_p12 = pneg %p1964_p10 }
  0x15   : > { %p1762_p13 = pnand %p1761_p12, %p1760_p11 }
  0x17   : > { %p1763_p0 = pneg %p1762_p13 }
  0x19   : > { %p1768_p2 = pnand %p1766_p1, %p1763_p0 }
  0x1b   : > { %1771 = shalt.err (!%p1768_p2)
}
  0x1c   : > { %s1772_s18 = scalar_lea.vmem %s292_s23, 2048  ;;  %p1780_p9 = scmp.lt.s32.totalorder %s292_s23, %s292_s23 }
  0x1d   : > { %p1773_p4 = scmp.ne.s32.totalorder %s292_s23, %s1772_s18  ;;  %p1781_p8 = scmp.lt.s32.totalorder %s1772_s18, %s1772_s18 }
  0x1f   : > { %p1775_p5 = pnand %p1773_p4, %p1761_p12  ;;  %p1782_p7 = por %p1781_p8, %p1780_p9 }
  0x21   : > { %p1776_p6 = pneg %p1775_p5 }
  0x23   : > { %p1783_p3 = pnand %p1782_p7, %p1776_p6 }
  0x25   : > { %1786 = shalt.err (!%p1783_p3)
}
  0x26   : > { %s1848_s22 = smov 128   ;;  %s1849_s25 = smov 8  }
  0x27   : > { %1687 = dma.hbm_to_vmem [thread:$0]  (!%p1964_p10), %s2272_s6, 2048, %s292_s23, [#allocation6], %s1848_s22, %s1848_s22, %s1849_s25  }
  0x28   : > { %p1437_p11 = scmp.ge.s32.totalorder %s1837_s13, 2 }
  0x29   : > { %p2285_p13 = scmp.ne.s32.totalorder (!%p1437_p11), %s2281_s17, 0 }
  0x2a   : > { %311 = sbr.rel (%p1437_p11) target bundleno = 56 (0x38), region = 48 }
  0x31   : > { %314 = sbr.rel (!%p2285_p13) target bundleno = 56 (0x38), region = 52  ;;  %s316_s27 = sand.u32 (%p2285_p13), 1, %s1825_s10  }
  0x32   : > { %s1439_s29 = sshll.u32 (%p2285_p13), %s1833_s12, 3  ;;  %s1438_s14 = sshll.u32 (%p2285_p13), %s316_s27, 4 }
  0x33   : > { %s323_s15 = scalar_lea.vmem (%p2285_p13), %s2266_s0, %s1439_s29  ;;  %s318_s24 = scalar_lea.vmem (%p2285_p13), [#allocation4], %s1438_s14 }
  0x34   : > { %v353_v0 = vld [vmem:[%s323_s15] sm:$0xff] (%p2285_p13)  ;;  %v355_v1 = vld [vmem:[%s323_s15 + $0x10] sm:$0xff] (%p2285_p13) }
  0x35   : > { %354 = vst [vmem:[%s318_s24] sm:$0xff] (%p2285_p13), %v353_v0  ;;  %356 = vst [vmem:[%s318_s24 + $0x8] sm:$0xff] (%p2285_p13), %v355_v1 }
  0x38 PF: > { %p2286_p3 = scmp.ne.s32.totalorder %s2282_s19, 0 }
  0x39   : > { %s368_s17 = sand.u32 (!%p2286_p3), 1, %s1821_s30   ;;  %p2287_p7 = scmp.ne.s32.totalorder (!%p2286_p3), %s2283_s20, 0 }
  0x3a   : > { %365 = sbr.rel (%p2286_p3) target bundleno = 796 (0x31c), region = 90  ;;  %s1441_s23 = sshll.u32 (!%p2286_p3), %s368_s17, 4 }
  0x3b   : > { %s1995_s22 = scalar_lea.vmem (!%p2286_p3), [#allocation4], %s1441_s23 }
  0x41   : > { %1816 = dma.done.wait (%p2287_p7), [#allocation6], 2048  }
  0x42   : > { %1818 = vsyncadd (%p2287_p7), [#allocation6], 4294965248  ;;  %p1443_p8 = scmp.ne.s32.totalorder %s1829_s11, 0 }
  0x43   : > { %v423_v2 = vld [vmem:[%s2274_s8] sm:$0x3] (!%p1443_p8) }
  0x44   : > { %422 = sbr.rel (%p1443_p8) target bundleno = 75 (0x4b), region = 102  ;;  %424 = vst [vmem:[#allocation3] sm:$0x3] (!%p1443_p8), %v423_v2 }
  0x4b PF: > { %v2008_v3 = vld [vmem:[%s2269_s3] sm:$0xf]  ;;  %vm461_vm0 = vcmask 1043456   ;;  %v1850_v4 = vmov 0.0   ;;  %v430_v8 = vld [vmem:[%s1995_s22 + $0x8] sm:$0x1] }
  0x4c   : > { %1522 = vmatprep.subr.mxu0 %v1850_v4  ;;  %1527 = vmatprep.subr.mxu1 %v1850_v4  ;;  %v2015_v5 = vld [vmem:[%s2267_s1] ss:$0 sm:$0xff]  ;;  %v429_v7 = vld [vmem:[%s1995_s22] sm:$0x1]  ;;  %vm456_vm1 = vcmask 1041409   ;;  %vm458_vm2 = vcmask 31744  }
  0x4d   : > { %v2020_v6 = vld [vmem:[%s2268_s2] ss:$0 sm:$0xff]  ;;  %1523 = vmatpush3.msk.msra.mxu0 %vm461_vm0, %v2008_v3  ;;  %1528 = vmatpush3.msk.msra.mxu1 %vm461_vm0, %v2008_v3  ;;  %v437_v9 = vmul.f32 %v2015_v5, %v429_v7  ;;  %v536_v10 = vld [vmem:[%s1995_s22 + $0x1] sm:$0x1]  ;;  %vm1851_vm3 = vmmov 0   ;;  %v438_v11 = vmul.f32 %v2015_v5, %v430_v8  ;;  %s1463_s23 = sshll.u32 %s1829_s11, 3 }
  0x4e   : > { %1524 = vmatprep.mubr.msk.f32.mxu0 %vm1851_vm3, %v1850_v4  ;;  %1529 = vmatprep.mubr.msk.f32.mxu1 %vm1851_vm3, %v1850_v4  ;;  %v537_v12 = vld [vmem:[%s1995_s22 + $0x9] sm:$0x1]  ;;  %v538_v13 = vmul.f32 %v2015_v5, %v536_v10  ;;  %v620_v14 = vld [vmem:[%s1995_s22 + $0x2] sm:$0x1]  ;;  %v621_v15 = vld [vmem:[%s1995_s22 + $0xa] sm:$0x1] }
  0x4f   : > { %1532 = vmatprep.subr.mxu0 %v1850_v4  ;;  %1537 = vmatprep.subr.mxu1 %v1850_v4  ;;  %v539_v16 = vmul.f32 %v2015_v5, %v537_v12  ;;  %v622_v17 = vmul.f32 %v2015_v5, %v620_v14  ;;  %v704_v18 = vld [vmem:[%s1995_s22 + $0x3] sm:$0x1]  ;;  %v705_v19 = vld [vmem:[%s1995_s22 + $0xb] sm:$0x1]  ;;  %v788_v20 = vld [vmem:[%s1995_s22 + $0x4] sm:$0x1]  ;;  %v445_v21 = vadd.f32 %v2020_v6, %v437_v9 }
  0x50   : > { %v446_v22 = vadd.f32 %v2020_v6, %v438_v11  ;;  %v623_v23 = vmul.f32 %v2015_v5, %v621_v15  ;;  %v706_v24 = vmul.f32 %v2015_v5, %v704_v18  ;;  %v789_v25 = vld [vmem:[%s1995_s22 + $0xc] sm:$0x1]  ;;  %v872_v26 = vld [vmem:[%s1995_s22 + $0x5] sm:$0x1]  ;;  %v540_v27 = vadd.f32 %v2020_v6, %v538_v13  ;;  %v873_v31 = vld [vmem:[%s1995_s22 + $0xd] sm:$0x1] }
  0x51   : > { %v541_v28 = vadd.f32 %v2020_v6, %v539_v16  ;;  %v707_v29 = vmul.f32 %v2015_v5, %v705_v19  ;;  %v790_v30 = vmul.f32 %v2015_v5, %v788_v20  ;;  %v624_v33 = vadd.f32 %v2020_v6, %v622_v17  ;;  %v956_v36 = vld [vmem:[%s1995_s22 + $0x6] sm:$0x1]  ;;  %v957_v41 = vld [vmem:[%s1995_s22 + $0xe] sm:$0x1]  ;;  %v1040_v46 = vld [vmem:[%s1995_s22 + $0x7] sm:$0x1] }
  0x52   : > { %v455_v32 = vrot.slane %v446_v22, 7  ;;  %v625_v34 = vadd.f32 %v2020_v6, %v623_v23  ;;  %v791_v35 = vmul.f32 %v2015_v5, %v789_v25  ;;  %v708_v38 = vadd.f32 %v2020_v6, %v706_v24  ;;  %v1041_v51 = vld [vmem:[%s1995_s22 + $0xf] sm:$0x1]  ;;  %v2153_v12 = vld [vmem:[%s2271_s5 + $0x28] sm:$0xff]  ;;  %v2163_v14 = vld [vmem:[%s2271_s5 + $0x38] sm:$0xff]  ;;  %s2210_s24 = smov 0  }
  0x53   : > { %v544_v37 = vrot.slane %v541_v28, 7  ;;  %v709_v39 = vadd.f32 %v2020_v6, %v707_v29  ;;  %v874_v40 = vmul.f32 %v2015_v5, %v872_v26  ;;  %v875_v45 = vmul.f32 %v2015_v5, %v873_v31  ;;  %v2127_v9 = vld [vmem:[%s2271_s5] sm:$0xff]  ;;  %v2137_v10 = vld [vmem:[%s2271_s5 + $0x10] sm:$0xff]  ;;  %v2173_v16 = vld [vmem:[%s2271_s5 + $0x48] sm:$0xff] }
  0x54   : > { %v457_v42 = vsel %vm456_vm1, %v455_v32, %v445_v21  ;;  %v628_v43 = vrot.slane %v625_v34, 7  ;;  %v793_v44 = vadd.f32 %v2020_v6, %v791_v35  ;;  %v792_v49 = vadd.f32 %v2020_v6, %v790_v30  ;;  %v2148_v11 = vld [vmem:[%s2271_s5 + $0x20] sm:$0xff]  ;;  %v2158_v13 = vld [vmem:[%s2271_s5 + $0x30] sm:$0xff]  ;;  %v2183_v18 = vld [vmem:[%s2271_s5 + $0x58] sm:$0xff] }
  0x55   : > { %1525 = vmatmul.mubr.msk.f32.vlgmr.msra.gmra.mrb[0].mxu0 %vm458_vm2, %v457_v42  ;;  %v545_v47 = vsel %vm456_vm1, %v544_v37, %v540_v27  ;;  %v712_v48 = vrot.slane %v709_v39, 7  ;;  %v958_v50 = vmul.f32 %v2015_v5, %v956_v36  ;;  %v877_v54 = vadd.f32 %v2020_v6, %v875_v45  ;;  %v2168_v15 = vld [vmem:[%s2271_s5 + $0x40] sm:$0xff]  ;;  %v2178_v17 = vld [vmem:[%s2271_s5 + $0x50] sm:$0xff]  ;;  %v2193_v20 = vld [vmem:[%s2271_s5 + $0x68] sm:$0xff] }
  0x56   : > { %1530 = vmatmul.mubr.msk.f32.vlgmr.msra.gmra.mrb[0].mxu1 %vm458_vm2, %v545_v47  ;;  %1533 = vmatpush3.msk.msra.mxu0 %vm461_vm0, %v2008_v3  ;;  %v629_v52 = vsel %vm456_vm1, %v628_v43, %v624_v33  ;;  %v796_v53 = vrot.slane %v793_v44, 7  ;;  %v959_v55 = vmul.f32 %v2015_v5, %v957_v41  ;;  %v876_v57 = vadd.f32 %v2020_v6, %v874_v40  ;;  %v2188_v19 = vld [vmem:[%s2271_s5 + $0x60] sm:$0xff]  ;;  %v2198_v21 = vld [vmem:[%s2271_s5 + $0x70] sm:$0xff]  ;;  %v2203_v22 = vld [vmem:[%s2271_s5 + $0x78] sm:$0xff] }
  0x57   : > { %1538 = vmatpush3.msk.msra.mxu1 %vm461_vm0, %v2008_v3  ;;  %1534 = vmatprep.mubr.msk.f32.mxu0 %vm1851_vm3, %v1850_v4  ;;  %v713_v56 = vsel %vm456_vm1, %v712_v48, %v708_v38  ;;  %v1042_v58 = vmul.f32 %v2015_v5, %v1040_v46  ;;  %v880_v59 = vrot.slane %v877_v54, 7  ;;  %v1043_v61 = vmul.f32 %v2015_v5, %v1041_v51  ;;  %v1141_v23 = vld [vmem:[#allocation3] sm:$0x3]   ;;  %v1446_v24 = vld [vmem:[%s2270_s4] ss:$0 sm:$0xff] }
  0x58   : > { %1539 = vmatprep.mubr.msk.f32.mxu1 %vm1851_vm3, %v1850_v4  ;;  %1542 = vmatprep.subr.mxu0 %v1850_v4  ;;  %v961_v60 = vadd.f32 %v2020_v6, %v959_v55  ;;  %v797_v62 = vsel %vm456_vm1, %v796_v53, %v792_v49  ;;  %v960_v63 = vadd.f32 %v2020_v6, %v958_v50 }
  0x59   : > { %1547 = vmatprep.subr.mxu1 %v1850_v4  ;;  %1535 = vmatmul.mubr.msk.f32.vlgmr.msra.gmra.mrb[2].mxu0 %vm458_vm2, %v629_v52  ;;  %v1045_v1 = vadd.f32 %v2020_v6, %v1043_v61  ;;  %v881_v2 = vsel %vm456_vm1, %v880_v59, %v876_v57  ;;  %v1044_v5 = vadd.f32 %v2020_v6, %v1042_v58 }
  0x5a   : > { %1540 = vmatmul.mubr.msk.f32.vlgmr.msra.gmra.mrb[2].mxu1 %vm458_vm2, %v713_v56  ;;  %1543 = vmatpush3.msk.msra.mxu0 %vm461_vm0, %v2008_v3  ;;  %v964_v0 = vrot.slane %v961_v60, 7 }
  0x5b   : > { %1548 = vmatpush3.msk.msra.mxu1 %vm461_vm0, %v2008_v3  ;;  %1544 = vmatprep.mubr.msk.f32.mxu0 %vm1851_vm3, %v1850_v4  ;;  %v1048_v7 = vrot.slane %v1045_v1, 7 }
  0x5c   : > { %1549 = vmatprep.mubr.msk.f32.mxu1 %vm1851_vm3, %v1850_v4  ;;  %1552 = vmatprep.subr.mxu0 %v1850_v4  ;;  %v965_v8 = vsel %vm456_vm1, %v964_v0, %v960_v63 }
  0x5d   : > { %1557 = vmatprep.subr.mxu1 %v1850_v4  ;;  %1545 = vmatmul.mubr.msk.f32.vlgmr.msra.gmra.mrb[4].mxu0 %vm458_vm2, %v797_v62  ;;  %v1049_v6 = vsel %vm456_vm1, %v1048_v7, %v1044_v5 }
  0x5e   : > { %1550 = vmatmul.mubr.msk.f32.vlgmr.msra.gmra.mrb[4].mxu1 %vm458_vm2, %v881_v2  ;;  %1553 = vmatpush3.msk.msra.mxu0 %vm461_vm0, %v2008_v3 }
  0x5f   : > { %1558 = vmatpush3.msk.msra.mxu1 %vm461_vm0, %v2008_v3  ;;  %1554 = vmatprep.mubr.msk.f32.mxu0 %vm1851_vm3, %v1850_v4  ;;  %v2132_v3 = vld [vmem:[%s2271_s5 + $0x8] sm:$0xff] }
  0x60   : > { %1559 = vmatprep.mubr.msk.f32.mxu1 %vm1851_vm3, %v1850_v4  ;;  %v2143_v4 = vld [vmem:[%s2271_s5 + $0x18] sm:$0xff] }
  0x61   : > { %1555 = vmatmul.mubr.msk.f32.vlgmr.msra.gmra.mrb[6].mxu0 %vm458_vm2, %v965_v8 }
  0x62   : > { %1560 = vmatmul.mubr.msk.f32.vlgmr.msra.gmra.mrb[6].mxu1 %vm458_vm2, %v1049_v6 }
 0x128   : > { %v531_v25 = vpop.f32.mrb[0].mxu0 }
 0x129   : > { %v532_v26 = vadd.f32 %v1446_v24, %v531_v25  ;;  %v614_v27 = vpop.f32.mrb[0].mxu1  ;;  %v1526_v28 = vpop.f32.mrb[1].mxu0 }
 0x12a   : > { %v615_v29 = vadd.f32 %v1446_v24, %v614_v27  ;;  %v1531_v30 = vpop.f32.mrb[1].mxu1 }
 0x12b   : > { %535 = vst [vmem:[#allocation2] sm:$0x3] %v532_v26 }
 0x12c   : > { %619 = vst [vmem:[#allocation2 + $0x2] sm:$0x3] %v615_v29  ;;  %v698_v31 = vpop.f32.mrb[2].mxu0 }
 0x12d   : > { %v699_v32 = vadd.f32 %v1446_v24, %v698_v31  ;;  %v782_v33 = vpop.f32.mrb[2].mxu1  ;;  %v1536_v34 = vpop.f32.mrb[3].mxu0 }
 0x12e   : > { %v783_v35 = vadd.f32 %v1446_v24, %v782_v33  ;;  %v1541_v36 = vpop.f32.mrb[3].mxu1 }
 0x12f   : > { %703 = vst [vmem:[#allocation2 + $0x4] sm:$0x3] %v699_v32 }
 0x130   : > { %787 = vst [vmem:[#allocation2 + $0x6] sm:$0x3] %v783_v35  ;;  %v866_v37 = vpop.f32.mrb[4].mxu0 }
 0x131   : > { %v867_v38 = vadd.f32 %v1446_v24, %v866_v37  ;;  %v950_v39 = vpop.f32.mrb[4].mxu1  ;;  %v1546_v40 = vpop.f32.mrb[5].mxu0 }
 0x132   : > { %v951_v41 = vadd.f32 %v1446_v24, %v950_v39  ;;  %v1551_v42 = vpop.f32.mrb[5].mxu1 }
 0x133   : > { %871 = vst [vmem:[#allocation2 + $0x8] sm:$0x3] %v867_v38 }
 0x134   : > { %955 = vst [vmem:[#allocation2 + $0xa] sm:$0x3] %v951_v41  ;;  %v1034_v43 = vpop.f32.mrb[6].mxu0 }
 0x135   : > { %v1035_v44 = vadd.f32 %v1446_v24, %v1034_v43  ;;  %v1118_v45 = vpop.f32.mrb[6].mxu1  ;;  %v1556_v46 = vpop.f32.mrb[7].mxu0 }
 0x136   : > { %v1119_v47 = vadd.f32 %v1446_v24, %v1118_v45  ;;  %v1561_v48 = vpop.f32.mrb[7].mxu1 }
 0x137   : > { %1039 = vst [vmem:[#allocation2 + $0xc] sm:$0x3] %v1035_v44 }
 0x138   : > { %1123 = vst [vmem:[#allocation2 + $0xe] sm:$0x3] %v1119_v47 }
 0x139 LB: >> { %v1633_v49 = vpack.c.bf16 %v2132_v3, %v2127_v9  ;;  %v1852_v50 = vmov 0.0|0.0   ;;  %v1636_v51 = vpack.c.bf16 %v2143_v4, %v2137_v10  ;;  %vm1853_vm4 = vmmov 0   ;;  %s2235_s17 = sadd.s32 %s1845_s24, %s1463_s23  ;;  %s1464_s22 = sshll.u32 %s1845_s24, 1  ;;  %s1845_s24 = sphi %s2210_s24, %s1147_s24   ;;  %v1841_v23 = vphi %v1141_v23, %v2288_v23  }
 0x13a   : >> { %1632 = vmatprep.subr.bf16.mxu0 %v1852_v50  ;;  %v1854_v52 = vmov 0.0   ;;  %v1639_v53 = vpack.c.bf16 %v2153_v12, %v2148_v11  ;;  %v1642_v54 = vpack.c.bf16 %v2163_v14, %v2158_v13  ;;  %v1645_v55 = vpack.c.bf16 %v2173_v16, %v2168_v15  ;;  %s1150_s15 = scalar_lea.vmem [#allocation2], %s1464_s22  ;;  %p1465_p10 = scmp.lt.s32.totalorder %s2235_s17, 14 }
 0x13b   : >> { %1634 = vmatpush3.bf16.msra.mxu0 %v1633_v49  ;;  %1594 = vmatprep.mubr.msk.f32.mxu0 %vm1853_vm4, %v1854_v52  ;;  %v1648_v56 = vpack.c.bf16 %v2183_v18, %v2178_v17  ;;  %v1651_v57 = vpack.c.bf16 %v2193_v20, %v2188_v19  ;;  %v1654_v58 = vpack.c.bf16 %v2203_v22, %v2198_v21  ;;  %v1229_v0 = vld [vmem:[#allocation5] sm:$0xff] (!%p1465_p10)  ;;  %v1230_v1 = vld [vmem:[#allocation5 + $0x8] sm:$0xff] (!%p1465_p10)  ;;  %v1231_v2 = vld [vmem:[#allocation5 + $0x10] sm:$0xff] (!%p1465_p10)  ;;  %v1855_v5 = vmov (!%p1465_p10), 0.0|0.0   ;;  %s1467_s25 = sadd.s32 (!%p1465_p10), 4294967282, %s2235_s17 }
 0x13c   : >> { %1635 = vmatprep.subr.bf16.mxu0 %v1852_v50  ;;  %v1657_v7 = vpack.c.bf16 (!%p1465_p10), %v1230_v1, %v1229_v0  ;;  %v1232_v8 = vld [vmem:[#allocation5 + $0x18] sm:$0xff] (!%p1465_p10)  ;;  %vm1856_vm5 = vmmov (!%p1465_p10), 0   ;;  %v1857_v6 = vmov (!%p1465_p10), 0.0   ;;  %v1233_v24 = vld [vmem:[#allocation5 + $0x20] sm:$0xff] (!%p1465_p10)  ;;  %v1234_v25 = vld [vmem:[#allocation5 + $0x28] sm:$0xff] (!%p1465_p10)  ;;  %s1468_s19 = sshll.u32 (!%p1465_p10), %s1467_s25, 1 }
 0x13d   : >> { %v1663_v26 = vpack.c.bf16 (!%p1465_p10), %v1234_v25, %v1233_v24  ;;  %v1235_v27 = vld [vmem:[#allocation5 + $0x30] sm:$0xff] (!%p1465_p10)  ;;  %v1236_v28 = vld [vmem:[#allocation5 + $0x38] sm:$0xff] (!%p1465_p10)  ;;  %v1237_v30 = vld [vmem:[#allocation5 + $0x40] sm:$0xff] (!%p1465_p10)  ;;  %s1324_s27 = scalar_lea.vmem (!%p1465_p10), %s2275_s9, %s1468_s19 }
 0x13e   : >> { %v1666_v29 = vpack.c.bf16 (!%p1465_p10), %v1236_v28, %v1235_v27  ;;  %v1238_v31 = vld [vmem:[#allocation5 + $0x48] sm:$0xff] (!%p1465_p10)  ;;  %v1239_v33 = vld [vmem:[#allocation5 + $0x50] sm:$0xff] (!%p1465_p10)  ;;  %v1240_v34 = vld [vmem:[#allocation5 + $0x58] sm:$0xff] (!%p1465_p10) }
 0x13f   : >> { %1637 = vmatpush3.bf16.msra.mxu0 %v1636_v51  ;;  %v1151_v59 = vld [vmem:[%s1150_s15] sm:$0x3]  ;;  %v1669_v32 = vpack.c.bf16 (!%p1465_p10), %v1238_v31, %v1237_v30  ;;  %v1672_v35 = vpack.c.bf16 (!%p1465_p10), %v1240_v34, %v1239_v33  ;;  %v1241_v36 = vld [vmem:[#allocation5 + $0x60] sm:$0xff] (!%p1465_p10)  ;;  %v1243_v39 = vld [vmem:[#allocation5 + $0x70] sm:$0xff] (!%p1465_p10) }
 0x140   : >> { %1638 = vmatprep.subr.bf16.mxu0 %v1852_v50  ;;  %v1242_v37 = vld [vmem:[#allocation5 + $0x68] sm:$0xff] (!%p1465_p10)  ;;  %v1244_v40 = vld [vmem:[#allocation5 + $0x78] sm:$0xff] (!%p1465_p10) }
 0x141   : >> { %v1675_v38 = vpack.c.bf16 (!%p1465_p10), %v1242_v37, %v1241_v36  ;;  %v1678_v41 = vpack.c.bf16 (!%p1465_p10), %v1244_v40, %v1243_v39  ;;  %v1466_v42 = vld [vmem:[%s2273_s7] ss:$0 sm:$0xff] (!%p1465_p10) }
 0x143   : >> { %1640 = vmatpush3.bf16.msra.mxu0 %v1639_v53 }
 0x144   : >> { %1641 = vmatprep.subr.bf16.mxu0 %v1852_v50 }
 0x147   : >> { %1643 = vmatpush3.bf16.msra.mxu0 %v1642_v54 }
 0x148   : >> { %1644 = vmatprep.subr.bf16.mxu0 %v1852_v50 }
 0x14b   : >> { %1646 = vmatpush3.bf16.msra.mxu0 %v1645_v55 }
 0x14c   : >> { %1647 = vmatprep.subr.bf16.mxu0 %v1852_v50 }
 0x14f   : >> { %1649 = vmatpush3.bf16.msra.mxu0 %v1648_v56 }
 0x150   : >> { %1650 = vmatprep.subr.bf16.mxu0 %v1852_v50 }
 0x153   : >> { %1652 = vmatpush3.bf16.msra.mxu0 %v1651_v57 }
 0x154   : >> { %1653 = vmatprep.subr.bf16.mxu0 %v1852_v50 }
 0x157   : >> { %1655 = vmatpush3.bf16.msra.mxu0 %v1654_v58 }
 0x158   : >> { %1656 = vmatprep.subr.bf16.mxu0 (!%p1465_p10), %v1855_v5 }
 0x15a   : >> { %1595 = vmatmul.mubr.f32.vlgmr.msra.gmra.mrb[0].mxu0 %v1841_v23  ;;  %v1660_v23 = vpack.c.bf16 (!%p1465_p10), %v1232_v8, %v1231_v2 }
 0x15b   : >> { %1629 = vmatprep.mubr.msk.f32.mxu0 (!%p1465_p10), %vm1856_vm5, %v1857_v6  ;;  %1658 = vmatpush3.bf16.msra.mxu0 (!%p1465_p10), %v1657_v7 }
 0x15c   : >> { %1659 = vmatprep.subr.bf16.mxu0 (!%p1465_p10), %v1855_v5 }
 0x15f   : >> { %1661 = vmatpush3.bf16.msra.mxu0 (!%p1465_p10), %v1660_v23 }
 0x160   : >> { %1662 = vmatprep.subr.bf16.mxu0 (!%p1465_p10), %v1855_v5 }
 0x163   : >> { %1664 = vmatpush3.bf16.msra.mxu0 (!%p1465_p10), %v1663_v26 }
 0x164   : >> { %1665 = vmatprep.subr.bf16.mxu0 (!%p1465_p10), %v1855_v5 }
 0x167   : >> { %1667 = vmatpush3.bf16.msra.mxu0 (!%p1465_p10), %v1666_v29 }
 0x168   : >> { %1668 = vmatprep.subr.bf16.mxu0 (!%p1465_p10), %v1855_v5 }
 0x16b   : >> { %1670 = vmatpush3.bf16.msra.mxu0 (!%p1465_p10), %v1669_v32 }
 0x16c   : >> { %1671 = vmatprep.subr.bf16.mxu0 (!%p1465_p10), %v1855_v5 }
 0x16f   : >> { %1673 = vmatpush3.bf16.msra.mxu0 (!%p1465_p10), %v1672_v35 }
 0x170   : >> { %1674 = vmatprep.subr.bf16.mxu0 (!%p1465_p10), %v1855_v5 }
 0x173   : >> { %1676 = vmatpush3.bf16.msra.mxu0 (!%p1465_p10), %v1675_v38 }
 0x174   : >> { %1677 = vmatprep.subr.bf16.mxu0 (!%p1465_p10), %v1855_v5 }
 0x177   : >> { %1679 = vmatpush3.bf16.msra.mxu0 (!%p1465_p10), %v1678_v41 }
 0x22d   : >> { %v1218_v60 = vpop.f32.mrb[0].mxu0 }
 0x22e   : >> { %v1222_v61 = vadd.f32 %v1218_v60, %v1151_v59  ;;  %v1596_v62 = vpop.f32.mrb[1].mxu0 }
 0x230   : >> { %1757 = vtanh.f32 %v1222_v61 }
 0x234   : >> { %1228 = sbr.rel (%p1465_p10) target bundleno = 786 (0x312), region = 113 }
 0x23a   : >> { %v1758_v63 = vpop.eup %1757  }
 0x23b   : >> { %1630 = vmatmul.mubr.f32.vlgmr.msra.gmra.mrb[0].mxu0 %v1758_v63 }
 0x30e   : >> { %v1318_v43 = vpop.f32.mrb[0].mxu0 }
 0x30f   : >> { %v1319_v44 = vadd.f32 %v1466_v42, %v1318_v43  ;;  %v1631_v45 = vpop.f32.mrb[1].mxu0 }
 0x311   : >> { %1325 = vst [vmem:[%s1324_s27] sm:$0x3] %v1319_v44 }
 0x312 PF: >> { %s1147_s24 = sadd.s32 1, %s1845_s24   ;;  %v2288_v23 = vmov %v1758_v63 }
 0x313   : >> { %p1144_p12 = scmp.ge.s32.totalorder %s1147_s24, 8  }
 0x314   : > { %1326 = vst [vmem:[#allocation3] sm:$0x3] (%p1144_p12), %v1758_v63 }
 0x315   : > { %1146 = sbr.rel (!%p1144_p12) target bundleno = 313 (0x139), region = 161 }
 0x31c PF: > { %s20_s13 = sadd.s32 1, %s1837_s13   ;;  %s2289_s29 = sld [smem:[#allocation8_spill]] }
 0x31d   : > { %p17_p0 = scmp.ge.s32.totalorder %s20_s13, 4   ;;  %s2290_s30 = smov %s1825_s10 }
 0x31e   : > { %s2291_s10 = smov %s1958_s21  ;;  %s2292_s11 = smov %s1833_s12 }
 0x31f   :  { %19 = sbr.rel (!%p17_p0) target bundleno = 3 (0x3), region = 172 }
 0x322   : > { %s2293_s12 = smov %s2289_s29 }
 0x326   :  { %1346 = vsyncpa [#allocation6], 1 }
 0x327   :  { %1348 = vsyncpa [#allocation6 + $0x1], 1 }

</bundles_post_ra>
